<compile_context>
chip_gen: v7x
topology: tpu7x:2x2x1
jax: 0.10.0
libtpu: 0.0.40
codegen_flags: <defaults>
</compile_context>

<pallas_src>
import jax
import jax.numpy as jnp
from jax.experimental import pallas as pl
from jax.experimental.pallas import tpu as pltpu

IN_DIM = 111
HID_DIM = 64
HID_PAD = 128          # hidden padded to a full vreg lane width
OUT_DIM = 1
DEFAULT_TILE_B = 8192  # ~4 MiB x-tile (f32, lane-padded); double-buffered x+out
MAX_TILE_B = 16384     # ~34 MiB total VMEM at f32 -- still fine on v7x (64 MiB)


def _round_up(n, m):
    return ((n + m - 1) // m) * m


def _round_down(n, m):
    return (n // m) * m


def mlp_kernel(x_ref, w1_ref, b1_ref, w2row_ref, b2_ref, o_ref):
    # x_ref:     (TB, 111)  VMEM  batch tile, pipelined per grid step (f32 or bf16)
    # w1_ref:    (111, 128) VMEM  lane-padded hidden; constant index_map -> resident
    # b1_ref:    (1, 128)   VMEM  f32, padded entries are zero
    # w2row_ref: (1, 128)   VMEM  f32, layer-2 weights as a row; padded cols zero
    # b2_ref:    (1,)       SMEM  f32 scalar bias
    # o_ref:     (TB, 1)    VMEM  f32 output (partial last tile is masked)
    x = x_ref[...]
    # Layer 1: MXU matmul with f32 accumulation + bias + ReLU on the VPU.
    h = jnp.dot(x, w1_ref[...], preferred_element_type=jnp.float32)
    h = jnp.maximum(h + b1_ref[...], 0.0)
    # (Dropout = identity in eval mode.)
    # Layer 2 (N=1): lane multiply + XLU row reduce instead of an N=1 MXU matmul.
    logit = jnp.sum(h * w2row_ref[...], axis=-1, keepdims=True) + b2_ref[0]
    o_ref[...] = jax.nn.sigmoid(logit).astype(o_ref.dtype)


def prepare_params(w1, b1, w2, b2, *, use_bf16=False):
    """Pad/reshape the Linear weights once (reuse across many forward calls).

    Hidden is padded 64 -> 128 with zeros. Padded b1 entries and padded w2-row
    columns are zero, so ReLU(0 + 0) = 0 contributes nothing to the layer-2
    reduction -> numerically identical to the unpadded model.
    """
    w_dtype = jnp.bfloat16 if use_bf16 else jnp.float32
    w1_p = jnp.zeros((IN_DIM, HID_PAD), jnp.float32).at[:, :HID_DIM].set(
        jnp.asarray(w1, jnp.float32)).astype(w_dtype)
    b1_p = jnp.zeros((1, HID_PAD), jnp.float32).at[:, :HID_DIM].set(
        jnp.asarray(b1, jnp.float32).reshape(1, HID_DIM))
    w2_row = jnp.zeros((1, HID_PAD), jnp.float32).at[:, :HID_DIM].set(
        jnp.asarray(w2, jnp.float32).reshape(HID_DIM, OUT_DIM).T)
    b2_s = jnp.asarray(b2, jnp.float32).reshape((1,))
    return w1_p, b1_p, w2_row, b2_s


def mlp_forward_prepared(x, params, *, tile_b=DEFAULT_TILE_B, use_bf16=False):
    """x: (B, 111) -> (B, 1) f32, matching Model(two_layers=False).forward (eval)."""
    w1_p, b1_p, w2_row, b2_s = params
    B = x.shape[0]
    x = x.astype(jnp.bfloat16 if use_bf16 else jnp.float32)

    # Tile selection:
    #  - multiple of 8 (BlockSpec (8,128) rule), capped at MAX_TILE_B;
    #  - capped at ~B/4 so large batches give >= 4 grid steps (megacore on v7x).
    # No padding of x: the last grid step may be a partial block (reads padded,
    # stores masked) -- the per-row compute makes pad rows irrelevant.
    tb_req = max(8, _round_down(min(int(tile_b), MAX_TILE_B), 8))
    tb_split = max(8, _round_up(pl.cdiv(B, 4), 8))
    TB = min(tb_req, tb_split)
    grid = (pl.cdiv(B, TB),)

    # Scoped-VMEM budget: double-buffered x tile (lane-padded to 128) +
    # double-buffered (TB,1) output tile (also lane-padded) + headroom.
    x_itemsize = jnp.dtype(x.dtype).itemsize
    vmem_limit = int(min(2 * TB * 128 * (x_itemsize + 4) + (4 << 20), 64 << 20))

    out = pl.pallas_call(
        mlp_kernel,
        out_shape=jax.ShapeDtypeStruct((B, OUT_DIM), jnp.float32),
        grid_spec=pltpu.PrefetchScalarGridSpec(
            num_scalar_prefetch=0,
            grid=grid,
            in_specs=[
                pl.BlockSpec((TB, IN_DIM), lambda i: (i, 0)),       # x: batch-tiled
                pl.BlockSpec((IN_DIM, HID_PAD), lambda i: (0, 0)),  # w1: VMEM-resident
                pl.BlockSpec((1, HID_PAD), lambda i: (0, 0)),       # b1
                pl.BlockSpec((1, HID_PAD), lambda i: (0, 0)),       # w2 row
                pl.BlockSpec(memory_space=pltpu.MemorySpace.SMEM),  # b2 scalar
            ],
            out_specs=pl.BlockSpec((TB, OUT_DIM), lambda i: (i, 0)),
        ),
        compiler_params=pltpu.CompilerParams(
            # Independent batch tiles -> megacore-shardable on v7x.
            dimension_semantics=("parallel",),
            vmem_limit_bytes=vmem_limit,
        ),
    )(x, w1_p, b1_p, w2_row, b2_s)
    return out


def mlp_forward(x, w1, b1, w2, b2, *, tile_b=DEFAULT_TILE_B, use_bf16=False):
    """Convenience wrapper: pads weights then runs the kernel."""
    params = prepare_params(w1, b1, w2, b2, use_bf16=use_bf16)
    return mlp_forward_prepared(x, params, tile_b=tile_b, use_bf16=use_bf16)


def init_params(key):
    """Deterministic init mimicking nn.Linear's uniform(-1/sqrt(fan_in), +)."""
    k1, k2, k3, k4 = jax.random.split(key, 4)
    bound1 = 1.0 / jnp.sqrt(jnp.float32(IN_DIM))
    bound2 = 1.0 / jnp.sqrt(jnp.float32(HID_DIM))
    w1 = jax.random.uniform(k1, (IN_DIM, HID_DIM), jnp.float32, -bound1, bound1)
    b1 = jax.random.uniform(k2, (HID_DIM,), jnp.float32, -bound1, bound1)
    w2 = jax.random.uniform(k3, (HID_DIM, OUT_DIM), jnp.float32, -bound2, bound2)
    b2 = jax.random.uniform(k4, (OUT_DIM,), jnp.float32, -bound2, bound2)
    return w1, b1, w2, b2


def reference_forward(x, w1, b1, w2, b2):
    h = jnp.maximum(
        jnp.dot(x, w1, precision=jax.lax.Precision.HIGHEST) + b1, 0.0)
    return jax.nn.sigmoid(
        jnp.dot(h, w2, precision=jax.lax.Precision.HIGHEST) + b2)


if __name__ == "__main__":
    key = jax.random.PRNGKey(0)
    kx, kx2, kp = jax.random.split(key, 3)

    w1, b1, w2, b2 = init_params(kp)

    # Pad weights once, reuse across calls (per perf feedback).
    params_f32 = prepare_params(w1, b1, w2, b2)

    # Small shape consistent with the module (batch=8, features=111).
    x = jax.random.normal(kx, (8, IN_DIM), dtype=jnp.float32)
    out = jax.block_until_ready(mlp_forward_prepared(x, params_f32))
    ref = reference_forward(x, w1, b1, w2, b2)
    assert out.shape == (8, OUT_DIM), out.shape
    assert jnp.allclose(out, ref, atol=2e-5, rtol=2e-5), "mismatch (batch=8)"

    # Exercise the multi-tile + ragged-batch path without any wrapper padding:
    # B=300, tile_b=128 -> TB=80, grid=(4,), last block partial (masked stores).
    x2 = jax.random.normal(kx2, (300, IN_DIM), dtype=jnp.float32)
    out2 = jax.block_until_ready(mlp_forward(x2, w1, b1, w2, b2, tile_b=128))
    ref2 = reference_forward(x2, w1, b1, w2, b2)
    assert out2.shape == (300, OUT_DIM), out2.shape
    assert jnp.allclose(out2, ref2, atol=2e-5, rtol=2e-5), "mismatch (batch=300)"

    # Opt-in bf16 HBM path (halves x read; f32 accumulation) -- looser tolerance.
    out3 = jax.block_until_ready(mlp_forward(x2, w1, b1, w2, b2, use_bf16=True))
    assert out3.shape == (300, OUT_DIM), out3.shape
    assert jnp.allclose(out3, ref2, atol=3e-2, rtol=3e-2), "mismatch (bf16 path)"

    print("KERNEL_OK")
</pallas_src>

<mosaic_0001>
module attributes {stable_mosaic.version = 11 : i64} {
  func.func @mlp_kernel(%arg0: i32, %arg1: memref<8x111xf32, #tpu.memory_space<vmem>>, %arg2: memref<111x128xf32, #tpu.memory_space<vmem>>, %arg3: memref<1x128xf32, #tpu.memory_space<vmem>>, %arg4: memref<1x128xf32, #tpu.memory_space<vmem>>, %arg5: memref<1xf32, #tpu.memory_space<smem>>, %arg6: memref<8x1xf32, #tpu.memory_space<vmem>>) attributes {dimension_semantics = [#tpu.dimension_semantics<parallel>], iteration_bounds = array<i64: 1>, scalar_prefetch = 0 : i64, scratch_operands = 0 : i64, tpu.core_type = #tpu.core_type<tc>, window_params = [{transform_indices = @transform_0, window_bounds = array<i64: 8, 111>}, {pipeline_mode = #tpu.pipeline_mode<synchronous>, transform_indices = @transform_1, window_bounds = array<i64: 111, 128>}, {pipeline_mode = #tpu.pipeline_mode<synchronous>, transform_indices = @transform_2, window_bounds = array<i64: 1, 128>}, {pipeline_mode = #tpu.pipeline_mode<synchronous>, transform_indices = @transform_3, window_bounds = array<i64: 1, 128>}, {transform_indices = @transform_4, window_bounds = array<i64: 1>}, {transform_indices = @transform_5, window_bounds = array<i64: 8, 1>}]} {
    %c0 = arith.constant 0 : index
    %c0_0 = arith.constant 0 : index
    %0 = vector.load %arg1[%c0, %c0_0] : memref<8x111xf32, #tpu.memory_space<vmem>>, vector<8x111xf32>
    %c0_1 = arith.constant 0 : index
    %c0_2 = arith.constant 0 : index
    %1 = vector.load %arg2[%c0_1, %c0_2] : memref<111x128xf32, #tpu.memory_space<vmem>>, vector<111x128xf32>
    %cst = arith.constant dense<0.000000e+00> : vector<8x128xf32>
    %2 = tpu.matmul %0, %1, %cst {dimension_numbers = #tpu.dot_dimension_numbers<[1], [0], [0], [1], [0, 0, 1, 1], [], []>} : vector<8x111xf32>, vector<111x128xf32>, vector<8x128xf32> -> vector<8x128xf32>
    %c0_3 = arith.constant 0 : index
    %c0_4 = arith.constant 0 : index
    %3 = vector.load %arg3[%c0_3, %c0_4] : memref<1x128xf32, #tpu.memory_space<vmem>>, vector<1x128xf32>
    %4 = vector.broadcast %3 : vector<1x128xf32> to vector<8x128xf32>
    %5 = arith.addf %2, %4 : vector<8x128xf32>
    %cst_5 = arith.constant 0.000000e+00 : f32
    %6 = vector.broadcast %cst_5 : f32 to vector<8x128xf32>
    %7 = arith.maximumf %5, %6 : vector<8x128xf32>
    %c0_6 = arith.constant 0 : index
    %c0_7 = arith.constant 0 : index
    %8 = vector.load %arg4[%c0_6, %c0_7] : memref<1x128xf32, #tpu.memory_space<vmem>>, vector<1x128xf32>
    %9 = vector.broadcast %8 : vector<1x128xf32> to vector<8x128xf32>
    %10 = arith.mulf %7, %9 : vector<8x128xf32>
    %cst_8 = arith.constant dense<0.000000e+00> : vector<8xf32>
    %11 = vector.multi_reduction <add>, %10, %cst_8 [1] : vector<8x128xf32> to vector<8xf32>
    %12 = vector.shape_cast %11 : vector<8xf32> to vector<8x1xf32>
    %c0_9 = arith.constant 0 : index
    %13 = memref.load %arg5[%c0_9] : memref<1xf32, #tpu.memory_space<smem>>
    %14 = vector.broadcast %13 : f32 to vector<8x1xf32>
    %15 = arith.addf %12, %14 : vector<8x1xf32>
    %16 = arith.negf %15 : vector<8x1xf32>
    %17 = math.exp %16 : vector<8x1xf32>
    %cst_10 = arith.constant 1.000000e+00 : f32
    %18 = vector.broadcast %cst_10 : f32 to vector<8x1xf32>
    %19 = arith.addf %18, %17 : vector<8x1xf32>
    %20 = arith.divf %18, %19 : vector<8x1xf32>
    %c0_11 = arith.constant 0 : index
    %c0_12 = arith.constant 0 : index
    %21 = vector.load %arg6[%c0_11, %c0_12] : memref<8x1xf32, #tpu.memory_space<vmem>>, vector<8x1xf32>
    tpu.vector_store %arg6[%c0_11, %c0_12], %20 {strides = array<i32>} : memref<8x1xf32, #tpu.memory_space<vmem>>, vector<8x1xf32>,
    return
  }
  func.func @transform_0(%arg0: i32) -> (i32, i32) {
    %c0_i32 = arith.constant 0 : i32
    %c0_i32_0 = arith.constant 0 : i32
    return %arg0, %c0_i32 : i32, i32
  }
  func.func @transform_1(%arg0: i32) -> (i32, i32) {
    %c0_i32 = arith.constant 0 : i32
    %c0_i32_0 = arith.constant 0 : i32
    %c0_i32_1 = arith.constant 0 : i32
    return %c0_i32, %c0_i32_0 : i32, i32
  }
  func.func @transform_2(%arg0: i32) -> (i32, i32) {
    %c0_i32 = arith.constant 0 : i32
    %c0_i32_0 = arith.constant 0 : i32
    %c0_i32_1 = arith.constant 0 : i32
    return %c0_i32, %c0_i32_0 : i32, i32
  }
  func.func @transform_3(%arg0: i32) -> (i32, i32) {
    %c0_i32 = arith.constant 0 : i32
    %c0_i32_0 = arith.constant 0 : i32
    %c0_i32_1 = arith.constant 0 : i32
    return %c0_i32, %c0_i32_0 : i32, i32
  }
  func.func @transform_4(%arg0: i32) -> i32 {
    %c0_i32 = arith.constant 0 : i32
    %c0_i32_0 = arith.constant 0 : i32
    return %c0_i32 : i32
  }
  func.func @transform_5(%arg0: i32) -> (i32, i32) {
    %c0_i32 = arith.constant 0 : i32
    %c0_i32_0 = arith.constant 0 : i32
    return %arg0, %c0_i32 : i32, i32
  }
}

</mosaic_0001>

<bundles_post_ra>
// kernel: tpu_custom_call.1
= control target key start
LH: loop header
LB: loop body
LE: loop exit
PB: predicated region body
PF: predicated region fallthrough
CT: control target
= control target key end

     0   :  { %11 = vsyncpa [#allocation4], 0  ;;  %s389_s0 = inlined_call_operand.hbm [shape: f32[8,111], index: 0, kind: input, shape index: {}]   ;;  %s390_s1 = inlined_call_operand.hbm [shape: f32[111,128], index: 1, kind: input, shape index: {}]   ;;  %s391_s2 = inlined_call_operand.vmem [shape: f32[1,128], index: 2, kind: input, shape index: {}]   ;;  %s392_s3 = inlined_call_operand.vmem [shape: f32[1,128], index: 3, kind: input, shape index: {}]   ;;  %s393_s4 = inlined_call_operand.<no memory space> [shape: f32[1], index: 4, kind: input, shape index: {}]   ;;  %s394_s5 = inlined_call_operand.vmem [shape: f32[8,1], index: 5, kind: output, shape index: {}]  }
   0x1   :  { %12 = vsyncpa [#allocation6], 0  ;;  %s308_s18 = smov [#allocation3]   ;;  %s309_s20 = smov [#allocation5]  }
   0x2   :  { %s19_s19 = sshll.u32 %s308_s18, 4  ;;  %s28_s21 = sshll.u32 %s309_s20, 4  ;;  %s20_s19 = int_to_ptr.vmem [resolvable:$true] %s19_s19  ;;  %s346_s21 = int_to_ptr.vmem [resolvable:$true] %s28_s21 }
   0x3   :  { %s260_s24 = scalar_lea.hbm %s389_s0, 128 }
   0x4   :  { %p261_p0 = scmp.ne.s32.totalorder %s389_s0, %s260_s24  ;;  %p264_p1 = scmp.lt.u32.totalorder %s260_s24, %s389_s0 }
   0x6   :  { %p266_p2 = pnand %p264_p1, %p261_p0 }
   0x8   :  { %269 = shalt.err (!%p266_p2)
}
   0x9   :  { %s270_s29 = scalar_lea.vmem %s20_s19, 128  ;;  %p275_p4 = scmp.lt.s32.totalorder %s20_s19, %s20_s19 }
   0xa   :  { %p271_p3 = scmp.ne.s32.totalorder %s20_s19, %s270_s29  ;;  %p276_p5 = scmp.lt.s32.totalorder %s270_s29, %s270_s29 }
   0xc   :  { %p277_p6 = por %p276_p5, %p275_p4 }
   0xe   :  { %p278_p7 = pnand %p277_p6, %p271_p3 }
  0x10   :  { %281 = shalt.err (!%p278_p7)
}
  0x11   :  { %22 = dma.hbm_to_vmem [thread:$0]  %s389_s0, 128, %s20_s19, [#allocation4]  }
  0x12   :  { %s282_s9 = scalar_lea.hbm %s390_s1, 1792 }
  0x13   :  { %p283_p8 = scmp.ne.s32.totalorder %s390_s1, %s282_s9  ;;  %p286_p9 = scmp.lt.u32.totalorder %s282_s9, %s390_s1 }
  0x15   :  { %p288_p10 = pnand %p286_p9, %p283_p8 }
  0x17   :  { %291 = shalt.err (!%p288_p10)
}
  0x18   :  { %s292_s14 = scalar_lea.vmem %s346_s21, 1792  ;;  %p297_p12 = scmp.lt.s32.totalorder %s346_s21, %s346_s21 }
  0x19   :  { %p293_p11 = scmp.ne.s32.totalorder %s346_s21, %s292_s14  ;;  %p298_p13 = scmp.lt.s32.totalorder %s292_s14, %s292_s14 }
  0x1b   :  { %p299_p0 = por %p298_p13, %p297_p12 }
  0x1d   :  { %p300_p1 = pnand %p299_p0, %p293_p11 }
  0x1f   :  { %303 = shalt.err (!%p300_p1)
}
  0x20   :  { %s310_s0 = smov 128   ;;  %s311_s15 = smov 8  }
  0x21   :  { %34 = dma.hbm_to_vmem [thread:$0]  %s390_s1, 1792, %s346_s21, [#allocation6], %s310_s0, %s310_s0, %s311_s15  }
  0x22   :  { %304 = dma.done.wait [#allocation4], 128  }
  0x23   :  { %305 = vsyncadd [#allocation4], 4294967168 }
  0x24   :  { %306 = dma.done.wait [#allocation6], 1792  }
  0x25   :  { %307 = vsyncadd [#allocation6], 4294965504  ;;  %v312_v0 = vmov 0.0|0.0   ;;  %vm313_vm0 = vmmov 0   ;;  %v314_v1 = vmov 0.0   ;;  %v48_v2 = vld [vmem:[#allocation5] sm:$0xff]  ;;  %v159_v31 = vstv %s393_s4 }
  0x26   :  { %226 = vmatprep.subr.bf16.mxu0 %v312_v0  ;;  %223 = vmatprep.mubr.msk.f32.mxu0 %vm313_vm0, %v314_v1  ;;  %v49_v3 = vld [vmem:[#allocation5 + $0x8] sm:$0xff]  ;;  %v50_v4 = vld [vmem:[#allocation5 + $0x10] sm:$0xff]  ;;  %v51_v6 = vld [vmem:[#allocation5 + $0x18] sm:$0xff]  ;;  %vm73_vm1 = vcmask 1046528   ;;  %vm315_vm2 = vmmov 1   ;;  %vm69_vm4 = vcmask 908288  }
  0x27   :  { %v227_v5 = vpack.c.bf16 %v49_v3, %v48_v2  ;;  %v230_v7 = vpack.c.bf16 %v51_v6, %v50_v4  ;;  %v52_v8 = vld [vmem:[#allocation5 + $0x20] sm:$0xff]  ;;  %v53_v9 = vld [vmem:[#allocation5 + $0x28] sm:$0xff]  ;;  %v54_v11 = vld [vmem:[#allocation5 + $0x30] sm:$0xff]  ;;  %vm167_vm5 = vcmask 7168  }
  0x28   :  { %v233_v10 = vpack.c.bf16 %v53_v9, %v52_v8  ;;  %v55_v12 = vld [vmem:[#allocation5 + $0x38] sm:$0xff]  ;;  %v56_v14 = vld [vmem:[#allocation5 + $0x40] sm:$0xff]  ;;  %v57_v15 = vld [vmem:[#allocation5 + $0x48] sm:$0xff] }
  0x29   :  { %228 = vmatpush3.bf16.msra.mxu0 %v227_v5  ;;  %v236_v13 = vpack.c.bf16 %v55_v12, %v54_v11  ;;  %v239_v16 = vpack.c.bf16 %v57_v15, %v56_v14  ;;  %v58_v17 = vld [vmem:[#allocation5 + $0x50] sm:$0xff]  ;;  %v59_v18 = vld [vmem:[#allocation5 + $0x58] sm:$0xff]  ;;  %v60_v20 = vld [vmem:[#allocation5 + $0x60] sm:$0xff] }
  0x2a   :  { %229 = vmatprep.subr.bf16.mxu0 %v312_v0  ;;  %v242_v19 = vpack.c.bf16 %v59_v18, %v58_v17  ;;  %v61_v21 = vld [vmem:[#allocation5 + $0x68] sm:$0x7f]  ;;  %vm246_vm3 = vmpackc.low %vm73_vm1, %vm315_vm2  ;;  %v47_v23 = vld [vmem:[#allocation3] sm:$0xff] }
  0x2b   :  { %v245_v22 = vpack.c.bf16 %v61_v21, %v60_v20  ;;  %v175_v24 = vld [vmem:[%s391_s2] ss:$0 sm:$0xff] }
  0x2c   :  { %v178_v28 = vld [vmem:[%s392_s3] ss:$0 sm:$0xff] }
  0x2d   :  { %231 = vmatpush3.bf16.msra.mxu0 %v230_v7 }
  0x2e   :  { %232 = vmatprep.subr.bf16.mxu0 %v312_v0 }
  0x31   :  { %234 = vmatpush3.bf16.msra.mxu0 %v233_v10 }
  0x32   :  { %235 = vmatprep.subr.bf16.mxu0 %v312_v0 }
  0x35   :  { %237 = vmatpush3.bf16.msra.mxu0 %v236_v13 }
  0x36   :  { %238 = vmatprep.subr.bf16.mxu0 %v312_v0 }
  0x39   :  { %240 = vmatpush3.bf16.msra.mxu0 %v239_v16 }
  0x3a   :  { %241 = vmatprep.subr.bf16.mxu0 %v312_v0 }
  0x3d   :  { %243 = vmatpush3.bf16.msra.mxu0 %v242_v19 }
  0x3e   :  { %244 = vmatprep.subr.bf16.mxu0 %v312_v0 }
  0x41   :  { %247 = vmatpush3.bf16.msk.msra.mxu0 %vm246_vm3, %v245_v22 }
  0x44   :  { %224 = vmatmul.mubr.msk.f32.vlgmr.msra.gmra.mrb[0].mxu0 %vm69_vm4, %v47_v23 }
 0x117   :  { %v143_v25 = vpop.f32.mrb[0].mxu0 }
 0x118   :  { %v144_v26 = vadd.f32 %v175_v24, %v143_v25  ;;  %v225_v27 = vpop.f32.mrb[1].mxu0 }
 0x11a   :  { %v147_v29 = vmax.f32 %v144_v26, 0.0 }
 0x11c   :  { %v155_v30 = vmul.f32 %v178_v28, %v147_v29 }
 0x11e   :  { %156 = vadd.xlane.f32.xlu0 %v155_v30 }
 0x1ab   :  { %v157_v32 = vpop.xlane.xlu0 %156 }
 0x1ac   :  { %v160_v33 = vadd.f32 %v159_v31, %v157_v32 }
 0x1ae   :  { %v179_v34 = vmul.f32 -1.442695, %v160_v33 }
 0x1b0   :  { %256 = vpow2.f32 %v179_v34 }
 0x1ba   :  { %v257_v35 = vpop.eup %256 }
 0x1bb   :  { %v164_v36 = vadd.f32 1.0, %v257_v35 }
 0x1bd   :  { %258 = vrcp.f32 %v164_v36 }
 0x1c7   :  { %v259_v37 = vpop.eup %258 }
 0x1c8   :  { %168 = vst.msk [vmem:[%s394_s5] sm:$0xff] %vm167_vm5, %v259_v37 }
 0x1c9   :  { %173 = vsyncpa [#allocation4], 1 }
 0x1ca   :  { %174 = vsyncpa [#allocation6], 1 }

</bundles_post_ra>
